<compile_context>
chip_gen: v5e
topology: v5e:2x2
jax: 0.10.0
libtpu: 0.0.40
codegen_flags: <defaults>
</compile_context>

<pallas_src>
import functools

import jax
import jax.numpy as jnp
from jax.experimental import pallas as pl
from jax.experimental.pallas import tpu as pltpu


# ---------------------------------------------------------------------------
# Kernels
# ---------------------------------------------------------------------------
def _rsoftmax_dense_kernel(x_ref, o_ref, *, radix, rest):
    """cardinality == 1: softmax over `radix` contiguous `rest`-wide slabs.

    x_ref / o_ref: (TB, F) lane-dense blocks, F = radix * rest, identical
    input/output layout (the transpose(1, 2) is the identity when G == 1).
    Padded tail rows (batch % TB != 0) may read garbage; those rows are
    masked on writeback so results are unaffected.
    """
    R, W = radix, rest
    x = x_ref[...].astype(jnp.float32)
    # Slab max across the R contiguous W-wide slabs (pure VPU, R is 2 or 4).
    m = x[:, 0:W]
    for r in range(1, R):
        m = jnp.maximum(m, x[:, r * W:(r + 1) * W])
    # Broadcast max back to full width so the heavy EUP work (exp) and the
    # final store run on the whole dense block (one unmasked full-width vst).
    mfull = jnp.concatenate([m] * R, axis=1)          # (TB, F)
    e = jnp.exp(x - mfull)
    s = e[:, 0:W]
    for r in range(1, R):
        s = s + e[:, r * W:(r + 1) * W]
    invfull = jnp.concatenate([pl.reciprocal(s)] * R, axis=1)  # exact recip
    o_ref[...] = (e * invfull).astype(o_ref.dtype)    # single dense store


def _rsoftmax_permute_kernel(x_ref, o_ref, *, radix):
    """cardinality > 1: the (cardinality <-> radix) permute is done by DMA.

    x_ref: (TB, 1, R, 1, W) block of the (B, G, R, 1, W) input view.
    o_ref: (TB, R, 1, 1, W) block of the (B, R, G, 1, W) output; the output
    BlockSpec index_map places it at group g, so the permute happens in the
    writeback DMA and the kernel issues only whole-block stores.
    """
    R = radix
    x = x_ref[...].astype(jnp.float32)                # (TB, 1, R, 1, W)
    # Radix reduction as elementwise ops over leading-axis slices: slices
    # along a leading dim are tile-subsets (no relayout, no lane masking).
    m = x[:, :, 0:1]
    for r in range(1, R):
        m = jnp.maximum(m, x[:, :, r:r + 1])
    e = jnp.exp(x - m)                                # broadcast on leading axis
    s = e[:, :, 0:1]
    for r in range(1, R):
        s = s + e[:, :, r:r + 1]
    y = e * pl.reciprocal(s)                          # exact (1e-5 tolerance)
    # (TB,1,R,1,W) -> (TB,R,1,1,W): minor (1, W) tiles and their flat order
    # are identical, so this reshape is pure re-indexing (no data movement).
    o_ref[...] = y.reshape(o_ref.shape).astype(o_ref.dtype)


def _sigmoid_kernel(x_ref, o_ref):
    x = x_ref[...].astype(jnp.float32)
    # sigmoid(x) == 0.5 * tanh(0.5 * x) + 0.5   (single EUP op + cheap VPU)
    o_ref[...] = (0.5 * jnp.tanh(0.5 * x) + 0.5).astype(o_ref.dtype)


# ---------------------------------------------------------------------------
# Tiling helpers
# ---------------------------------------------------------------------------
_VMEM_PIPELINE_BUDGET = 8 * 1024 * 1024   # fits v5e's 16 MiB default scoped
                                          # VMEM; v6e/v7x have >= 32 MiB.


def _round_up(x, m):
    return ((x + m - 1) // m) * m


def _pick_rows(n_rows, bytes_per_row, hard_cap=1024):
    """Rows per grid step: as many as the ~8 MiB double-buffered pipeline
    budget allows (amortizes ~0.35 us/step), a multiple of 8 (dense
    sublanes), and split into >= 2 parallel steps so both v7x TensorCores
    are used whenever the batch allows it."""
    if n_rows <= 8:
        return n_rows
    cap = max(8, _VMEM_PIPELINE_BUDGET // max(bytes_per_row, 1))
    t = min(n_rows, hard_cap, cap)
    t = min(t, _round_up(pl.cdiv(n_rows, 2), 8))      # >= 2 grid steps (v7x)
    return max(8, (t // 8) * 8)


# ---------------------------------------------------------------------------
# Wrapper (mirrors rSoftMax.forward)
# ---------------------------------------------------------------------------
def rsoftmax(x, radix, cardinality):
    """x: (B, C, H, W) NCHW, same as the PyTorch module."""
    batch = x.shape[0]
    feat = 1
    for d in x.shape[1:]:
        feat *= d

    if radix > 1:
        assert feat % (cardinality * radix) == 0
        rest = feat // (cardinality * radix)

        if cardinality == 1:
            # No permute needed: single lane-dense 2-D pass.
            xf = x.reshape(batch, feat)               # free reshape
            tb = _pick_rows(batch, bytes_per_row=16 * feat)   # in+out, 2x buf, f32
            grid = (pl.cdiv(batch, tb),)
            kernel = functools.partial(_rsoftmax_dense_kernel,
                                       radix=radix, rest=rest)
            out = pl.pallas_call(
                kernel,
                out_shape=jax.ShapeDtypeStruct((batch, feat), x.dtype),
                grid=grid,
                in_specs=[pl.BlockSpec((tb, feat), lambda b: (b, 0))],
                out_specs=pl.BlockSpec((tb, feat), lambda b: (b, 0)),
                compiler_params=pltpu.CompilerParams(
                    dimension_semantics=("parallel",)),
            )(xf)
            return out

        # cardinality > 1: DMA-level permute.  Input viewed as (B,G,R,1,W),
        # output produced directly in permuted (B,R,G,1,W) order; both views
        # are free (contiguous) reshapes, so no wrapper-side HBM transpose.
        G, R, W = cardinality, radix, rest
        xv = x.reshape(batch, G, R, 1, W)
        pad_w = _round_up(W, 128)
        # per-batch-row padded VMEM bytes: (in + out) x double-buffer x
        # R (1,W)->(8,padW) tiles x 4 bytes.
        bytes_per_row = 2 * 2 * R * 8 * pad_w * 4
        tb = _pick_rows(batch, bytes_per_row=bytes_per_row, hard_cap=512)
        grid = (pl.cdiv(batch, tb), G)
        kernel = functools.partial(_rsoftmax_permute_kernel, radix=R)
        out = pl.pallas_call(
            kernel,
            out_shape=jax.ShapeDtypeStruct((batch, R, G, 1, W), x.dtype),
            grid=grid,
            in_specs=[pl.BlockSpec((tb, 1, R, 1, W),
                                   lambda b, g: (b, g, 0, 0, 0))],
            out_specs=pl.BlockSpec((tb, R, 1, 1, W),
                                   lambda b, g: (b, 0, g, 0, 0)),
            compiler_params=pltpu.CompilerParams(
                dimension_semantics=("parallel", "parallel")),
        )(xv)
        # (B, R, G, 1, W) is already PyTorch's reshape(batch, -1) order.
        return out.reshape(batch, feat)

    # ---------------- radix == 1: elementwise sigmoid ----------------
    n = batch * feat
    cols = None
    for c in (8192, 4096, 2048, 1024, 512, 256, 128):     # widest lane-dense
        if n % c == 0 and n // c >= 8:                     # ... with >=8 rows
            cols = c
            break
    if cols is None:
        for c in (8192, 4096, 2048, 1024, 512, 256, 128):
            if n % c == 0:
                cols = c
                break
    pad = 0
    if cols is None:
        # Ragged size: pad the flat view to a multiple of 8x128 so the last
        # dim is always a 128-multiple (full-width unmasked stores).
        n_pad = _round_up(n, 1024)
        pad = n_pad - n
        cols = 128

    flat = x.reshape(-1)
    if pad:
        flat = jnp.pad(flat, (0, pad))
    rows = flat.shape[0] // cols
    xf = flat.reshape(rows, cols)

    tr = _pick_rows(rows, bytes_per_row=16 * cols)
    grid = (pl.cdiv(rows, tr),)
    out = pl.pallas_call(
        _sigmoid_kernel,
        out_shape=jax.ShapeDtypeStruct((rows, cols), x.dtype),
        grid=grid,
        in_specs=[pl.BlockSpec((tr, cols), lambda i: (i, 0))],
        out_specs=pl.BlockSpec((tr, cols), lambda i: (i, 0)),
        compiler_params=pltpu.CompilerParams(
            dimension_semantics=("parallel",)),
    )(xf)
    out = out.reshape(-1)
    if pad:
        out = out[:n]
    return out.reshape(x.shape)


# ---------------------------------------------------------------------------
# Pure-JAX reference for verification
# ---------------------------------------------------------------------------
def rsoftmax_ref(x, radix, cardinality):
    batch = x.shape[0]
    if radix > 1:
        xr = x.reshape(batch, cardinality, radix, -1)
        xr = jnp.transpose(xr, (0, 2, 1, 3))
        xr = jax.nn.softmax(xr, axis=1)
        return xr.reshape(batch, -1)
    return jax.nn.sigmoid(x)


if __name__ == "__main__":
    key = jax.random.PRNGKey(0)
    k1, k2, k3, k4 = jax.random.split(key, 4)

    # radix>1, cardinality>1, pooled (H=W=1): B=2, G=4, R=2, rest=8 -> C=64
    x = jax.random.normal(k1, (2, 64, 1, 1), dtype=jnp.float32)
    y = jax.block_until_ready(rsoftmax(x, radix=2, cardinality=4))
    assert y.shape == (2, 64), y.shape
    assert jnp.allclose(y, rsoftmax_ref(x, 2, 4), atol=1e-5, rtol=1e-5)

    # radix>1, cardinality>1 with spatial extent: rest = 8*4*4/(2*2) = 32
    x2 = jax.random.normal(k2, (2, 8, 4, 4), dtype=jnp.float32)
    y2 = jax.block_until_ready(rsoftmax(x2, radix=2, cardinality=2))
    assert y2.shape == (2, 128), y2.shape
    assert jnp.allclose(y2, rsoftmax_ref(x2, 2, 2), atol=1e-5, rtol=1e-5)

    # radix>1, cardinality==1 (typical ResNeSt config): B=2, R=2, rest=64
    x3 = jax.random.normal(k3, (2, 128, 1, 1), dtype=jnp.float32)
    y3 = jax.block_until_ready(rsoftmax(x3, radix=2, cardinality=1))
    assert y3.shape == (2, 128), y3.shape
    assert jnp.allclose(y3, rsoftmax_ref(x3, 2, 1), atol=1e-5, rtol=1e-5)

    # radix == 1 (sigmoid path): batch=2, channels=4, spatial=16x16
    x4 = jax.random.normal(k4, (2, 4, 16, 16), dtype=jnp.float32)
    y4 = jax.block_until_ready(rsoftmax(x4, radix=1, cardinality=1))
    assert y4.shape == x4.shape
    assert jnp.allclose(y4, rsoftmax_ref(x4, 1, 1), atol=1e-5, rtol=1e-5)

    print("KERNEL_OK")
</pallas_src>

<mosaic_0001>
module attributes {stable_mosaic.version = 11 : i64} {
  func.func @_rsoftmax_permute_kernel(%arg0: i32, %arg1: i32, %arg2: memref<2x1x2x1x8xf32, #tpu.memory_space<vmem>>, %arg3: memref<2x2x1x1x8xf32, #tpu.memory_space<vmem>>) attributes {dimension_semantics = [#tpu.dimension_semantics<parallel>, #tpu.dimension_semantics<parallel>], iteration_bounds = array<i64: 1, 4>, scalar_prefetch = 0 : i64, scratch_operands = 0 : i64, tpu.core_type = #tpu.core_type<tc>, window_params = [{transform_indices = @transform_0, window_bounds = array<i64: 2, 1, 2, 1, 8>}, {transform_indices = @transform_1, window_bounds = array<i64: 2, 2, 1, 1, 8>}]} {
    %c0 = arith.constant 0 : index
    %c0_0 = arith.constant 0 : index
    %c0_1 = arith.constant 0 : index
    %c0_2 = arith.constant 0 : index
    %c0_3 = arith.constant 0 : index
    %0 = vector.load %arg2[%c0, %c0_0, %c0_1, %c0_2, %c0_3] : memref<2x1x2x1x8xf32, #tpu.memory_space<vmem>>, vector<2x1x2x1x8xf32>
    %1 = vector.extract_strided_slice %0 {offsets = [0, 0, 0, 0, 0], sizes = [2, 1, 1, 1, 8], strides = [1, 1, 1, 1, 1]} : vector<2x1x2x1x8xf32> to vector<2x1x1x1x8xf32>
    %2 = vector.extract_strided_slice %0 {offsets = [0, 0, 1, 0, 0], sizes = [2, 1, 1, 1, 8], strides = [1, 1, 1, 1, 1]} : vector<2x1x2x1x8xf32> to vector<2x1x1x1x8xf32>
    %3 = arith.maximumf %1, %2 : vector<2x1x1x1x8xf32>
    %4 = vector.broadcast %3 : vector<2x1x1x1x8xf32> to vector<2x1x2x1x8xf32>
    %5 = arith.subf %0, %4 : vector<2x1x2x1x8xf32>
    %6 = math.exp %5 : vector<2x1x2x1x8xf32>
    %7 = vector.extract_strided_slice %6 {offsets = [0, 0, 0, 0, 0], sizes = [2, 1, 1, 1, 8], strides = [1, 1, 1, 1, 1]} : vector<2x1x2x1x8xf32> to vector<2x1x1x1x8xf32>
    %8 = vector.extract_strided_slice %6 {offsets = [0, 0, 1, 0, 0], sizes = [2, 1, 1, 1, 8], strides = [1, 1, 1, 1, 1]} : vector<2x1x2x1x8xf32> to vector<2x1x1x1x8xf32>
    %9 = arith.addf %7, %8 : vector<2x1x1x1x8xf32>
    %10 = tpu.reciprocal %9 : vector<2x1x1x1x8xf32> -> vector<2x1x1x1x8xf32>
    %11 = vector.broadcast %10 : vector<2x1x1x1x8xf32> to vector<2x1x2x1x8xf32>
    %12 = arith.mulf %6, %11 : vector<2x1x2x1x8xf32>
    %13 = vector.shape_cast %12 : vector<2x1x2x1x8xf32> to vector<2x2x1x1x8xf32>
    %c0_4 = arith.constant 0 : index
    %c0_5 = arith.constant 0 : index
    %c0_6 = arith.constant 0 : index
    %c0_7 = arith.constant 0 : index
    %c0_8 = arith.constant 0 : index
    %14 = vector.load %arg3[%c0_4, %c0_5, %c0_6, %c0_7, %c0_8] : memref<2x2x1x1x8xf32, #tpu.memory_space<vmem>>, vector<2x2x1x1x8xf32>
    tpu.vector_store %arg3[%c0_4, %c0_5, %c0_6, %c0_7, %c0_8], %13 {strides = array<i32>} : memref<2x2x1x1x8xf32, #tpu.memory_space<vmem>>, vector<2x2x1x1x8xf32>,
    return
  }
  func.func @transform_0(%arg0: i32, %arg1: i32) -> (i32, i32, i32, i32, i32) {
    %c0_i32 = arith.constant 0 : i32
    %c0_i32_0 = arith.constant 0 : i32
    %c0_i32_1 = arith.constant 0 : i32
    %c0_i32_2 = arith.constant 0 : i32
    return %arg0, %arg1, %c0_i32, %c0_i32_0, %c0_i32_1 : i32, i32, i32, i32, i32
  }
  func.func @transform_1(%arg0: i32, %arg1: i32) -> (i32, i32, i32, i32, i32) {
    %c0_i32 = arith.constant 0 : i32
    %c0_i32_0 = arith.constant 0 : i32
    %c0_i32_1 = arith.constant 0 : i32
    %c0_i32_2 = arith.constant 0 : i32
    return %arg0, %c0_i32, %arg1, %c0_i32_0, %c0_i32_1 : i32, i32, i32, i32, i32
  }
}

</mosaic_0001>

<bundles_post_ra>
// kernel: tpu_custom_call.1
= control target key start
LH: loop header
LB: loop body
LE: loop exit
PB: predicated region body
PF: predicated region fallthrough
CT: control target
= control target key end

     0   :  { %6 = vsyncpa [#allocation3], 0  ;;  %s685_s0 = inlined_call_operand.hbm [shape: f32[2,4,2,1,8], index: 0, kind: input, shape index: {}]   ;;  %s686_s1 = inlined_call_operand.hbm [shape: f32[2,2,4,1,8], index: 1, kind: output, shape index: {}]  }
   0x1   :  { %8 = vsyncpa [#allocation3 + $0x1], 0 }
   0x2   :  { %9 = vsyncpa [#allocation4], 0 }
   0x3   :  { %11 = vsyncpa [#allocation4 + $0x1], 0  ;;  %s542_s6 = smov 0   ;;  %s544_s7 = smov 0  }
   0x4   :  { %s546_s8 = smov 0   ;;  %s548_s9 = smov 0  }
   0x5   :  { %s550_s10 = smov 0   ;;  %s552_s11 = smov 0  }
   0x6 LB: > { %s340_s12 = sadd.s32 4294967295, %s521_s11   ;;  %s341_s13 = sadd.s32 4294967294, %s521_s11   ;;  %s521_s11 = sphi %s552_s11, %s17_s11   ;;  %s517_s10 = sphi %s550_s10, %s695_s10   ;;  %s513_s9 = sphi %s548_s9, %s694_s9   ;;  %s509_s8 = sphi %s546_s8, %s693_s8   ;;  %s505_s7 = sphi %s544_s7, %s692_s7   ;;  %s501_s6 = sphi %s542_s6, %s691_s6  }
   0x7   : > { %s26_s14 = sadd.s32 1, %s517_s10  ;;  %s38_s15 = sadd.s32 1, %s509_s8 }
   0x8   : > { %p27_p0 = scmp.ge.s32.totalorder %s26_s14, 4  ;;  %p45_p1 = scmp.ne.s32.totalorder %s509_s8, %s505_s7 }
   0x9   : > { %p46_p2 = scmp.eq.s32.totalorder %s521_s11, 0  ;;  %p51_p3 = scmp.ne.s32.totalorder %s505_s7, %s501_s6 }
   0xa   : > { %s697_s14 = smov (%p27_p0, %s26_s14), 0  ;;  %p52_p5 = scmp.eq.s32.totalorder %s340_s12, 0 }
   0xb   : > { %p583_p4 = por %p46_p2, %p45_p1  ;;  %s34_s17 = ssub.s32 %s517_s10, %s697_s14 }
   0xc   : > { %p77_p6 = scmp.eq.s32.totalorder %s340_s12, 3  ;;  %p36_p7 = scmp.eq.s32.totalorder %s34_s17, 0 }
   0xd   : > { %p589_p8 = por %p52_p5, %p51_p3  ;;  %p83_p10 = scmp.eq.s32.totalorder %s341_s13, 3 }
   0xe   : > { %p593_p9 = por %p77_p6, %p45_p1  ;;  %p343_p12 = scmp.ge.s32.totalorder %s521_s11, 4 }
   0xf   : > { %s598_s20 = scalar_select %p36_p7, %s509_s8, %s38_s15  }
  0x10   : > { %p600_p11 = por %p83_p10, %p51_p3  ;;  %99 = sbr.rel (%p343_p12) target bundleno = 35 (0x23), region = 16 }
  0x15   : > { %s103_s22 = sand.u32 1, %s509_s8   ;;  %s345_s23 = sshll.u32 %s517_s10, 1 }
  0x16   : > { %s344_s24 = sshll.u32 %s103_s22, 2  ;;  %s114_s27 = scalar_lea.hbm %s685_s0, %s345_s23 }
  0x17   : > { %s354_s28 = scalar_select %p583_p4, [#allocation0], [#allocation8] }
  0x18   : > { %s127_s29 = sshll.u32 %s114_s27, 4  ;;  %s107_s30 = scalar_lea.vmem [#allocation2], %s344_s24  ;;  %s128_s29 = int_to_ptr.hbm [resolvable:$true] %s127_s29 }
  0x19   : > { %s129_s2 = sshll.u32 %s107_s30, 4  ;;  %s119_s3 = sld [smem:[%s354_s28]]   ;;  %s130_s2 = int_to_ptr.vmem [resolvable:$true] %s129_s2 }
  0x1a   : > { %s523_s4 = smov 128   ;;  %s524_s5 = smov 32  }
  0x1b   : > { %355 = sst [smem:[#allocation7]] (%p583_p4), %s523_s4  ;;  %s525_s12 = smov 2  }
  0x1c   : > { %356 = sst [smem:[#allocation7 + $0x1]] (%p583_p4), %s524_s5  ;;  %s526_s13 = smov 16  }
  0x1d   : > { %357 = sst [smem:[#allocation7 + $0x2]] (%p583_p4), %s525_s12  ;;  %s527_s23 = smov 1  }
  0x1e   : > { %358 = sst [smem:[#allocation7 + $0x3]] (%p583_p4), %s526_s13  ;;  %s104_s24 = scalar_lea.sflag [#allocation3], %s103_s22 }
  0x1f   : > { %s346_s15 = sshll.u32 %s119_s3, 26  ;;  %359 = sst [smem:[#allocation7 + $0x4]] (%p583_p4), %s526_s13 }
  0x20   : > { %s347_s17 = sadd.s32 134217728, %s346_s15  ;;  %360 = sst [smem:[#allocation7 + $0x5]] (%p583_p4), %s527_s23 }
  0x21   : > { %s528_s25 = smov [#allocation6]  }
  0x22   : > { %361 = dma.general (%p583_p4), %s128_s29, 64, %s130_s2, %s104_s24, %s528_s25, [#allocation7], %s347_s17, 0  }
  0x23 PF: > { %p348_p13 = scmp.ge.s32.totalorder %s521_s11, 1  ;;  %p150_p0 = scmp.lt.s32.totalorder %s521_s11, 5 }
  0x25   : > { %p151_p1 = pnand %p348_p13, %p150_p0 }
  0x26   : > { %s629_s26 = sand.u32 (!%p151_p1), 1, %s505_s7  }
  0x27   : > { %154 = sbr.rel (%p151_p1) target bundleno = 89 (0x59), region = 24  ;;  %s349_s27 = sshll.u32 (!%p151_p1), %s629_s26, 2 }
  0x28   : > { %s157_s28 = scalar_lea.sflag (!%p151_p1), [#allocation3], %s629_s26  ;;  %s160_s22 = scalar_lea.vmem (!%p151_p1), [#allocation2], %s349_s27 }
  0x2c   : > { %492 = dma.done.wait (%p589_p8), %s157_s28, 64  }
  0x2d   : > { %494 = vsyncadd (%p589_p8), %s157_s28, 4294967232  ;;  %v182_v0 = vld [vmem:[%s160_s22] sm:$0x1]  ;;  %v183_v1 = vld [vmem:[%s160_s22 + $0x1] sm:$0x1]  ;;  %s252_s29 = scalar_lea.hbm %s686_s1, %s513_s9  ;;  %vm234_vm7 = vcmask 57344  }
  0x2e   : > { %v184_v2 = vld [vmem:[%s160_s22 + $0x2] sm:$0x1]  ;;  %v186_v3 = vmax.f32 %v182_v0, %v183_v1  ;;  %v185_v4 = vld [vmem:[%s160_s22 + $0x3] sm:$0x1]  ;;  %s179_s30 = scalar_lea.vmem [#allocation5], %s349_s27  ;;  %s645_s3 = sshll.u32 %s252_s29, 4  ;;  %s256_s3 = int_to_ptr.hbm [resolvable:$true] %s645_s3 }
  0x2f   : > { %v187_v5 = vmax.f32 %v184_v2, %v185_v4  ;;  %s253_s2 = sshll.u32 %s179_s30, 4  ;;  %s240_s9 = scalar_lea.sflag [#allocation4], %s629_s26  ;;  %s254_s2 = int_to_ptr.vmem [resolvable:$true] %s253_s2 }
  0x30   : > { %v188_v6 = vsub.f32 %v182_v0, %v186_v3  ;;  %v189_v7 = vsub.f32 %v183_v1, %v186_v3  ;;  %s453_s4 = sshra.s32 %s256_s3, 4  ;;  %s459_s15 = scalar_lea.hbm %s686_s1, 16  ;;  %s454_s4 = int_to_ptr.hbm [resolvable:$true] %s453_s4 }
  0x31   : > { %v190_v8 = vsub.f32 %v184_v2, %v187_v5  ;;  %v191_v9 = vsub.f32 %v185_v4, %v187_v5  ;;  %s455_s5 = scalar_lea.hbm %s454_s4, 4  ;;  %p460_p5 = scmp.lt.s32.totalorder %s454_s4, %s686_s1 }
  0x32   : > { %v192_v10 = vmul.f32 1.442695, %v188_v6  ;;  %v194_v11 = vmul.f32 1.442695, %v189_v7  ;;  %p456_p2 = scmp.ne.s32.totalorder %s454_s4, %s455_s5  ;;  %p461_p6 = scmp.lt.s32.totalorder %s459_s15, %s455_s5 }
  0x33   : > { %v196_v12 = vmul.f32 1.442695, %v190_v8  ;;  %v198_v13 = vmul.f32 1.442695, %v191_v9 }
  0x34   : > { %427 = vpow2.f32 %v192_v10  ;;  %p457_p3 = pnand %p456_p2, %p593_p9  ;;  %p462_p7 = por %p461_p6, %p460_p5 }
  0x35   : > { %429 = vpow2.f32 %v194_v11 }
  0x36   : > { %431 = vpow2.f32 %v196_v12  ;;  %p458_p4 = pneg %p457_p3 }
  0x37   : > { %433 = vpow2.f32 %v198_v13 }
  0x38   : > { %p463_p8 = pnand %p462_p7, %p458_p4 }
  0x3a   : > { %v428_v14 = vpop.eup %427 }
  0x3b   : > { %v430_v15 = vpop.eup %429 }
  0x3c   : > { %v432_v16 = vpop.eup %431  ;;  %v200_v17 = vadd.f32 %v430_v15, %v428_v14 }
  0x3d   : > { %v434_v18 = vpop.eup %433 }
  0x3e   : > { %435 = vrcp.f32 %v200_v17  ;;  %v201_v19 = vadd.f32 %v434_v18, %v432_v16  ;;  %v213_v22 = vand.u32 2147483648, %v200_v17  ;;  %vm207_vm0 = vweird.f32 %v200_v17 }
  0x3f   : > { %v211_v25 = vand.u32 2147483647, %v200_v17 }
  0x40   : > { %437 = vrcp.f32 %v201_v19  ;;  %v214_v28 = vor.u32 1.1754944e-38, %v213_v22  ;;  %v227_v29 = vand.u32 2147483648, %v201_v19  ;;  %vm221_vm3 = vweird.f32 %v201_v19 }
  0x41   : > { %v225_v31 = vand.u32 2147483647, %v201_v19  ;;  %vm212_vm5 = vcmp.eq.f32.partialorder %v211_v25, 8.507059e+37 }
  0x42   : > { %v228_v35 = vor.u32 1.1754944e-38, %v227_v29 }
  0x43   : > { %vm226_vm8 = vcmp.eq.f32.partialorder %v225_v31, 8.507059e+37 }
  0x44   : > { %v436_v20 = vpop.eup %435 }
  0x45   : > { %v203_v21 = vmul.f32 %v436_v20, %v200_v17  ;;  %vm208_vm1 = vweird.f32 %v436_v20 }
  0x46   : > { %v438_v23 = vpop.eup %437  ;;  %vm209_vm2 = vmor %vm207_vm0, %vm208_vm1 }
  0x47   : > { %v204_v24 = vsub.f32 1.0, %v203_v21  ;;  %v217_v26 = vmul.f32 %v438_v23, %v201_v19  ;;  %vm222_vm4 = vweird.f32 %v438_v23 }
  0x48   : > { %vm223_vm6 = vmor %vm221_vm3, %vm222_vm4 }
  0x49   : > { %v205_v27 = vmul.f32 %v436_v20, %v204_v24  ;;  %v218_v30 = vsub.f32 1.0, %v217_v26 }
  0x4b   : > { %v206_v32 = vadd.f32 %v436_v20, %v205_v27  ;;  %v219_v33 = vmul.f32 %v438_v23, %v218_v30 }
  0x4d   : > { %v210_v34 = vsel %vm209_vm2, %v436_v20, %v206_v32  ;;  %v220_v37 = vadd.f32 %v438_v23, %v219_v33 }
  0x4e   : > { %v215_v36 = vsel %vm212_vm5, %v214_v28, %v210_v34 }
  0x4f   : > { %v230_v38 = vmul.f32 %v428_v14, %v215_v36  ;;  %v231_v39 = vmul.f32 %v430_v15, %v215_v36  ;;  %v224_v40 = vsel %vm223_vm6, %v438_v23, %v220_v37 }
  0x50   : > { %v229_v41 = vsel %vm226_vm8, %v228_v35, %v224_v40 }
  0x51   : > { %235 = vst.msk [vmem:[%s179_s30] sm:$0x1] %vm234_vm7, %v230_v38  ;;  %v232_v42 = vmul.f32 %v432_v16, %v229_v41  ;;  %v233_v43 = vmul.f32 %v434_v18, %v229_v41 }
  0x52   : > { %236 = vst.msk [vmem:[%s179_s30 + $0x1] sm:$0x1] %vm234_vm7, %v231_v39 }
  0x53   : > { %237 = vst.msk [vmem:[%s179_s30 + $0x2] sm:$0x1] %vm234_vm7, %v232_v42 }
  0x54   : > { %238 = vst.msk [vmem:[%s179_s30 + $0x3] sm:$0x1] %vm234_vm7, %v233_v43 }
  0x55   : > { %466 = shalt.err (!%p463_p8)
}
  0x56   : > { %s529_s24 = smov 16   ;;  %s530_s25 = smov 64  }
  0x57   : > { %s531_s26 = smov 1  }
  0x58   : > { %363 = dma.vmem_to_hbm [thread:$0]  (%p593_p9), %s254_s2, 64, %s256_s3, %s240_s9, %s529_s24, %s530_s25, %s531_s26  }
  0x59 PF: > { %p369_p10 = scmp.ge.s32.totalorder %s521_s11, 2  ;;  %s270_s27 = sand.u32 1, %s501_s6  }
  0x5a   : > { %s271_s28 = scalar_lea.sflag [#allocation4], %s270_s27 }
  0x5b   : > { %p366_p12 = pnand %p369_p10, %p600_p11 }
  0x5d   : > { %p367_p13 = pneg %p366_p12 }
  0x5f   : > { %496 = dma.done.wait (%p367_p13), %s271_s28, 64  }
  0x60   : > { %498 = vsyncadd (%p367_p13), %s271_s28, 4294967232  ;;  %s17_s11 = sadd.s32 1, %s521_s11   ;;  %s691_s6 = smov %s505_s7 }
  0x61   : > { %p14_p0 = scmp.ge.s32.totalorder %s17_s11, 6   ;;  %s692_s7 = smov %s509_s8 }
  0x62   : > { %s693_s8 = smov %s598_s20  ;;  %s694_s9 = smov %s517_s10 }
  0x63   : > { %s695_s10 = smov %s697_s14  ;;  %16 = sbr.rel (!%p14_p0) target bundleno = 6 (0x6), region = 74 }
  0x68   :  { %277 = vsyncpa [#allocation3], 1 }
  0x69   :  { %279 = vsyncpa [#allocation3 + $0x1], 1 }
  0x6a   :  { %280 = vsyncpa [#allocation4], 1 }
  0x6b   :  { %282 = vsyncpa [#allocation4 + $0x1], 1 }

</bundles_post_ra>
